<compile_context>
chip_gen: v6e
topology: v6e:2x2x1
jax: 0.10.0
libtpu: 0.0.40
codegen_flags: <defaults>
</compile_context>

<pallas_src>
import functools

import jax
import jax.numpy as jnp
from jax import lax
from jax.experimental import pallas as pl
from jax.experimental.pallas import tpu as pltpu


def _vq_kernel(x_ref, embT_ref, emb_ref, e2_ref,
               enc_ref, q_ref, sq_ref, cnt_ref, sse_ref, *, n_rows):
    # x: (TN, D) row tile; embT: (D, K); emb: (K, D); e2: (1, K) — all VMEM-resident.
    x = x_ref[...].astype(jnp.float32)
    eT = embT_ref[...]                                   # (D, K) f32
    e = emb_ref[...]                                     # (K, D) f32
    e2 = e2_ref[...]                                     # (1, K) f32
    TN, D = x.shape
    K = e.shape[0]

    # distances = ||x||^2 + ||e||^2 - 2 x e^T.  The per-row ||x||^2 term is constant
    # along K and cannot change the per-row ranking (argmin / sort order), so it is
    # omitted — only the ranking is consumed downstream.
    xe = lax.dot_general(x, eT, (((1,), (0,)), ((), ())),
                         preferred_element_type=jnp.float32)   # (TN, K) on the MXU
    dist = e2 - 2.0 * xe                                       # ranking-equivalent

    col = lax.broadcasted_iota(jnp.int32, (1, K), 1)           # (1, K), broadcasts below
    big = jnp.float32(3e38)

    def row_min_idx(d):
        # first column index attaining the row minimum -> (TN, 1) int32
        mval = jnp.min(d, axis=1, keepdims=True)
        return jnp.min(jnp.where(d == mval, col, K), axis=1, keepdims=True)

    idx0 = row_min_idx(dist)                                   # nearest (torch.argmin)
    excl0 = col == idx0
    idx1 = row_min_idx(jnp.where(excl0, big, dist))
    excl1 = excl0 | (col == idx1)
    idx2 = row_min_idx(jnp.where(excl1, big, dist))            # coding_idx[:, 2]

    enc = (col == idx0).astype(jnp.float32)                    # one-hot encodings
    sec = (col == idx2).astype(jnp.float32)                    # 3rd-nearest one-hot
    enc_ref[...] = enc

    # quantized = enc @ emb ; second_quantized = sec @ emb.  Fused into one MXU pass
    # (halves push/drain overhead of two tiny matmuls) when the tile is 8-aligned.
    if TN % 8 == 0:
        both = jnp.concatenate([enc, sec], axis=0)             # (2*TN, K)
        qq = lax.dot_general(both, e, (((1,), (0,)), ((), ())),
                             preferred_element_type=jnp.float32)
        q, sq = qq[:TN], qq[TN:]
    else:
        q = lax.dot_general(enc, e, (((1,), (0,)), ((), ())),
                            preferred_element_type=jnp.float32)
        sq = lax.dot_general(sec, e, (((1,), (0,)), ((), ())),
                             preferred_element_type=jnp.float32)
    q_ref[...] = q.astype(q_ref.dtype)
    sq_ref[...] = sq.astype(sq_ref.dtype)

    # Per-tile partial reductions (counts for perplexity, SSE for the commitment loss).
    # The ragged last block's garbage rows are masked out via the global row index.
    row = pl.program_id(0) * TN + lax.broadcasted_iota(jnp.int32, (TN, 1), 0)
    valid = (row < n_rows).astype(jnp.float32)                 # (TN, 1)
    cnt_ref[...] = jnp.sum(enc * valid, axis=0, keepdims=True).reshape(1, 1, K)
    diff = (q - x) * valid
    sse_ref[...] = jnp.sum(diff * diff, axis=1, keepdims=True).sum(
        axis=0, keepdims=True).reshape(1, 1, 1)


def _vmem_capacity_bytes():
    # Generation-aware: 64 MiB/TC on v7x, 128 MiB on v5e/v6e; conservative fallback.
    try:
        return int(pltpu.get_tpu_info().vmem_capacity_bytes)
    except Exception:
        return 64 * 1024 * 1024


def _round_up(v, m):
    return (v + m - 1) // m * m


def _choose_tile_n(N, K, D):
    """Largest row tile whose lane-padded live set fits ~1/4 of physical VMEM, while
    guaranteeing >=2 grid steps whenever N allows it (v7x megacore / DMA pipelining)."""
    budget = _vmem_capacity_bytes() // 4
    Dp, Kp = _round_up(D, 128), _round_up(K, 128)      # VMEM tiles pad lanes to 128
    # double-buffered x/enc/q/sq I/O tiles + f32 dist/mask/one-hot temporaries, per row
    bytes_per_row = 4 * (8 * Dp + 8 * Kp)
    # VMEM-resident codebook in both layouts (double-buffered) + ||e||^2
    resident = 2 * 4 * (_round_up(K, 8) * Dp + _round_up(D, 8) * Kp) + 2 * 4 * Kp
    tn = (budget - resident) // bytes_per_row
    tn = min(tn, 2048)
    if N > 8:
        tn = min(tn, pl.cdiv(N, 2))                    # >= 2 grid steps
    tn = max(8, (tn // 8) * 8)                         # (8, 128) sublane constraint
    if tn >= N:
        return N                                       # single full-extent block (tiny N)
    return tn


@functools.partial(jax.jit, static_argnames=("commitment_cost",))
def ema_forward(inputs, emb_weight, commitment_cost=0.25):
    """Eval-mode forward of EMA.

    Returns (loss, quantized, perplexity, encodings, second_quantized)."""
    bs, kpts, seq = inputs.shape
    K, D = emb_weight.shape
    # inputs.reshape(bs, kpts//3, 3, seq).view(-1, D) == inputs.reshape(-1, D) (row-major).
    flat = inputs.reshape(-1, D)
    N = flat.shape[0]

    # Codebook stays f32 (PyTorch parameters are f32); distance math is pure f32 so the
    # argmin ranking matches the reference even for bf16 activations.
    emb = emb_weight.astype(jnp.float32)                       # (K, D)
    embT = emb.T                                               # (D, K) pre-transposed
    e2 = jnp.sum(emb * emb, axis=1)[None, :]                   # (1, K) hoisted ||e||^2

    tn = _choose_tile_n(N, K, D)
    num_tiles = pl.cdiv(N, tn)
    kernel = functools.partial(_vq_kernel, n_rows=N)

    enc, q, sq, cnt, sse = pl.pallas_call(
        kernel,
        out_shape=(
            jax.ShapeDtypeStruct((N, K), jnp.float32),             # encodings (API output)
            jax.ShapeDtypeStruct((N, D), inputs.dtype),            # quantized codes
            jax.ShapeDtypeStruct((N, D), inputs.dtype),            # 3rd-nearest codes
            jax.ShapeDtypeStruct((num_tiles, 1, K), jnp.float32),  # per-tile code counts
            jax.ShapeDtypeStruct((num_tiles, 1, 1), jnp.float32),  # per-tile SSE
        ),
        grid_spec=pltpu.PrefetchScalarGridSpec(
            num_scalar_prefetch=0,
            grid=(num_tiles,),
            in_specs=[
                pl.BlockSpec((tn, D), lambda i: (i, 0)),           # x row tile
                pl.BlockSpec((D, K), lambda i: (0, 0)),            # codebook^T: resident
                pl.BlockSpec((K, D), lambda i: (0, 0)),            # codebook:   resident
                pl.BlockSpec((1, K), lambda i: (0, 0)),            # ||e||^2:    resident
            ],
            out_specs=(
                pl.BlockSpec((tn, K), lambda i: (i, 0)),
                pl.BlockSpec((tn, D), lambda i: (i, 0)),
                pl.BlockSpec((tn, D), lambda i: (i, 0)),
                pl.BlockSpec((1, 1, K), lambda i: (i, 0, 0)),
                pl.BlockSpec((1, 1, 1), lambda i: (i, 0, 0)),
            ),
        ),
        compiler_params=pltpu.CompilerParams(
            dimension_semantics=("parallel",),                     # megacore row split
            vmem_limit_bytes=_vmem_capacity_bytes() // 2,
        ),
    )(flat, embT, emb, e2)

    # Tiny per-tile partials -> final reductions (no HBM re-read of enc / q / flat).
    counts = jnp.sum(cnt, axis=(0, 1))                             # (K,)
    e_latent_loss = jnp.sum(sse) / (N * D)                         # mse(quantized, inputs)
    loss = commitment_cost * e_latent_loss

    # Straight-through estimator: inputs + (quantized - inputs).detach() == quantized
    # (value-wise in the forward pass).
    quantized = q.reshape(bs, kpts, seq)
    second_quantized = sq.reshape(bs, kpts, seq)

    avg_probs = counts / N
    perplexity = jnp.exp(-jnp.sum(avg_probs * jnp.log(avg_probs + 1e-10)))

    return loss, quantized, perplexity, enc, second_quantized


if __name__ == "__main__":
    # Small shapes consistent with the module: kpts divisible by 3, (bs*kpts*seq) % D == 0.
    bs, kpts, seq = 2, 6, 8
    num_embeddings, embedding_dim = 16, 8
    commitment_cost = 0.25

    key = jax.random.PRNGKey(0)
    k_in, k_emb = jax.random.split(key)
    x = jax.random.normal(k_in, (bs, kpts, seq), dtype=jnp.float32)
    # nn.Embedding(...).weight.data.normal_() -> standard normal codebook.
    emb_weight = jax.random.normal(k_emb, (num_embeddings, embedding_dim), dtype=jnp.float32)

    loss, quantized, perplexity, encodings, second_quantized = ema_forward(
        x, emb_weight, commitment_cost=commitment_cost
    )
    jax.block_until_ready((loss, quantized, perplexity, encodings, second_quantized))

    assert quantized.shape == (bs, kpts, seq)
    assert second_quantized.shape == (bs, kpts, seq)
    assert encodings.shape == (bs * kpts * seq // embedding_dim, num_embeddings)
    # Internal consistency: every encoding row is one-hot, and quantized values equal the
    # codebook row selected by that one-hot.
    assert float(jnp.max(jnp.abs(jnp.sum(encodings, axis=1) - 1.0))) < 1e-6
    sel = emb_weight[jnp.argmax(encodings, axis=1)]
    assert bool(jnp.allclose(quantized.reshape(-1, embedding_dim), sel, atol=1e-3))
    print("KERNEL_OK")
</pallas_src>

<mosaic_0001>
module attributes {stable_mosaic.version = 11 : i64} {
  func.func @_vq_kernel(%arg0: i32, %arg1: memref<8x8xf32, #tpu.memory_space<vmem>>, %arg2: memref<8x16xf32, #tpu.memory_space<vmem>>, %arg3: memref<16x8xf32, #tpu.memory_space<vmem>>, %arg4: memref<1x16xf32, #tpu.memory_space<vmem>>, %arg5: memref<8x16xf32, #tpu.memory_space<vmem>>, %arg6: memref<8x8xf32, #tpu.memory_space<vmem>>, %arg7: memref<8x8xf32, #tpu.memory_space<vmem>>, %arg8: memref<1x1x16xf32, #tpu.memory_space<vmem>>, %arg9: memref<1x1x1xf32, #tpu.memory_space<vmem>>) attributes {dimension_semantics = [#tpu.dimension_semantics<parallel>], iteration_bounds = array<i64: 2>, scalar_prefetch = 0 : i64, scratch_operands = 0 : i64, tpu.core_type = #tpu.core_type<tc>, window_params = [{transform_indices = @transform_0, window_bounds = array<i64: 8, 8>}, {pipeline_mode = #tpu.pipeline_mode<synchronous>, transform_indices = @transform_1, window_bounds = array<i64: 8, 16>}, {pipeline_mode = #tpu.pipeline_mode<synchronous>, transform_indices = @transform_2, window_bounds = array<i64: 16, 8>}, {pipeline_mode = #tpu.pipeline_mode<synchronous>, transform_indices = @transform_3, window_bounds = array<i64: 1, 16>}, {transform_indices = @transform_4, window_bounds = array<i64: 8, 16>}, {transform_indices = @transform_5, window_bounds = array<i64: 8, 8>}, {transform_indices = @transform_6, window_bounds = array<i64: 8, 8>}, {transform_indices = @transform_7, window_bounds = array<i64: 1, 1, 16>}, {transform_indices = @transform_8, window_bounds = array<i64: 1, 1, 1>}]} {
    %c0 = arith.constant 0 : index
    %c0_0 = arith.constant 0 : index
    %0 = vector.load %arg1[%c0, %c0_0] : memref<8x8xf32, #tpu.memory_space<vmem>>, vector<8x8xf32>
    %c0_1 = arith.constant 0 : index
    %c0_2 = arith.constant 0 : index
    %1 = vector.load %arg2[%c0_1, %c0_2] : memref<8x16xf32, #tpu.memory_space<vmem>>, vector<8x16xf32>
    %c0_3 = arith.constant 0 : index
    %c0_4 = arith.constant 0 : index
    %2 = vector.load %arg3[%c0_3, %c0_4] : memref<16x8xf32, #tpu.memory_space<vmem>>, vector<16x8xf32>
    %c0_5 = arith.constant 0 : index
    %c0_6 = arith.constant 0 : index
    %3 = vector.load %arg4[%c0_5, %c0_6] : memref<1x16xf32, #tpu.memory_space<vmem>>, vector<1x16xf32>
    %cst = arith.constant dense<0.000000e+00> : vector<8x16xf32>
    %4 = tpu.matmul %0, %1, %cst {dimension_numbers = #tpu.dot_dimension_numbers<[1], [0], [0], [1], [0, 0, 1, 1], [], []>} : vector<8x8xf32>, vector<8x16xf32>, vector<8x16xf32> -> vector<8x16xf32>
    %cst_7 = arith.constant 2.000000e+00 : f32
    %5 = vector.broadcast %cst_7 : f32 to vector<8x16xf32>
    %6 = arith.mulf %5, %4 : vector<8x16xf32>
    %7 = vector.broadcast %3 : vector<1x16xf32> to vector<8x16xf32>
    %8 = arith.subf %7, %6 : vector<8x16xf32>
    %9 = tpu.iota {dimensions = array<i32: 1>} : vector<1x16xi32>
    %cst_8 = arith.constant dense<0x7F800000> : vector<8xf32>
    %10 = vector.multi_reduction <minimumf>, %8, %cst_8 [1] : vector<8x16xf32> to vector<8xf32>
    %11 = vector.shape_cast %10 : vector<8xf32> to vector<8x1xf32>
    %12 = vector.broadcast %11 : vector<8x1xf32> to vector<8x16xf32>
    %13 = arith.cmpf oeq, %8, %12 : vector<8x16xf32>
    %c16_i32 = arith.constant 16 : i32
    %14 = vector.shape_cast %9 : vector<1x16xi32> to vector<1x16xi32>
    %15 = vector.broadcast %14 : vector<1x16xi32> to vector<8x16xi32>
    %16 = vector.broadcast %c16_i32 : i32 to vector<8x16xi32>
    %17 = arith.select %13, %15, %16 : vector<8x16xi1>, vector<8x16xi32>
    %cst_9 = arith.constant dense<2147483647> : vector<8xi32>
    %18 = vector.multi_reduction <minsi>, %17, %cst_9 [1] : vector<8x16xi32> to vector<8xi32>
    %19 = vector.shape_cast %18 : vector<8xi32> to vector<8x1xi32>
    %20 = vector.broadcast %9 : vector<1x16xi32> to vector<8x16xi32>
    %21 = vector.broadcast %19 : vector<8x1xi32> to vector<8x16xi32>
    %22 = arith.cmpi eq, %20, %21 : vector<8x16xi32>
    %cst_10 = arith.constant 3.000000e+38 : f32
    %23 = vector.broadcast %cst_10 : f32 to vector<8x16xf32>
    %24 = arith.select %22, %23, %8 : vector<8x16xi1>, vector<8x16xf32>
    %cst_11 = arith.constant dense<0x7F800000> : vector<8xf32>
    %25 = vector.multi_reduction <minimumf>, %24, %cst_11 [1] : vector<8x16xf32> to vector<8xf32>
    %26 = vector.shape_cast %25 : vector<8xf32> to vector<8x1xf32>
    %27 = vector.broadcast %26 : vector<8x1xf32> to vector<8x16xf32>
    %28 = arith.cmpf oeq, %24, %27 : vector<8x16xf32>
    %c16_i32_12 = arith.constant 16 : i32
    %29 = vector.shape_cast %9 : vector<1x16xi32> to vector<1x16xi32>
    %30 = vector.broadcast %29 : vector<1x16xi32> to vector<8x16xi32>
    %31 = vector.broadcast %c16_i32_12 : i32 to vector<8x16xi32>
    %32 = arith.select %28, %30, %31 : vector<8x16xi1>, vector<8x16xi32>
    %cst_13 = arith.constant dense<2147483647> : vector<8xi32>
    %33 = vector.multi_reduction <minsi>, %32, %cst_13 [1] : vector<8x16xi32> to vector<8xi32>
    %34 = vector.shape_cast %33 : vector<8xi32> to vector<8x1xi32>
    %35 = vector.broadcast %9 : vector<1x16xi32> to vector<8x16xi32>
    %36 = vector.broadcast %34 : vector<8x1xi32> to vector<8x16xi32>
    %37 = arith.cmpi eq, %35, %36 : vector<8x16xi32>
    %38 = arith.ori %22, %37 : vector<8x16xi1>
    %cst_14 = arith.constant 3.000000e+38 : f32
    %39 = vector.broadcast %cst_14 : f32 to vector<8x16xf32>
    %40 = arith.select %38, %39, %8 : vector<8x16xi1>, vector<8x16xf32>
    %cst_15 = arith.constant dense<0x7F800000> : vector<8xf32>
    %41 = vector.multi_reduction <minimumf>, %40, %cst_15 [1] : vector<8x16xf32> to vector<8xf32>
    %42 = vector.shape_cast %41 : vector<8xf32> to vector<8x1xf32>
    %43 = vector.broadcast %42 : vector<8x1xf32> to vector<8x16xf32>
    %44 = arith.cmpf oeq, %40, %43 : vector<8x16xf32>
    %c16_i32_16 = arith.constant 16 : i32
    %45 = vector.shape_cast %9 : vector<1x16xi32> to vector<1x16xi32>
    %46 = vector.broadcast %45 : vector<1x16xi32> to vector<8x16xi32>
    %47 = vector.broadcast %c16_i32_16 : i32 to vector<8x16xi32>
    %48 = arith.select %44, %46, %47 : vector<8x16xi1>, vector<8x16xi32>
    %cst_17 = arith.constant dense<2147483647> : vector<8xi32>
    %49 = vector.multi_reduction <minsi>, %48, %cst_17 [1] : vector<8x16xi32> to vector<8xi32>
    %50 = vector.shape_cast %49 : vector<8xi32> to vector<8x1xi32>
    %51 = vector.broadcast %9 : vector<1x16xi32> to vector<8x16xi32>
    %52 = vector.broadcast %19 : vector<8x1xi32> to vector<8x16xi32>
    %53 = arith.cmpi eq, %51, %52 : vector<8x16xi32>
    %54 = arith.extui %53 : vector<8x16xi1> to vector<8x16xi32>
    %55 = arith.sitofp %54 : vector<8x16xi32> to vector<8x16xf32>
    %56 = vector.broadcast %9 : vector<1x16xi32> to vector<8x16xi32>
    %57 = vector.broadcast %50 : vector<8x1xi32> to vector<8x16xi32>
    %58 = arith.cmpi eq, %56, %57 : vector<8x16xi32>
    %59 = arith.extui %58 : vector<8x16xi1> to vector<8x16xi32>
    %60 = arith.sitofp %59 : vector<8x16xi32> to vector<8x16xf32>
    %c0_18 = arith.constant 0 : index
    %c0_19 = arith.constant 0 : index
    %61 = vector.load %arg5[%c0_18, %c0_19] : memref<8x16xf32, #tpu.memory_space<vmem>>, vector<8x16xf32>
    tpu.vector_store %arg5[%c0_18, %c0_19], %55 {strides = array<i32>} : memref<8x16xf32, #tpu.memory_space<vmem>>, vector<8x16xf32>,
    %62 = tpu.concatenate %55, %60 in 0 : vector<8x16xf32>, vector<8x16xf32> -> vector<16x16xf32>
    %cst_20 = arith.constant dense<0.000000e+00> : vector<16x8xf32>
    %63 = tpu.matmul %62, %2, %cst_20 {dimension_numbers = #tpu.dot_dimension_numbers<[1], [0], [0], [1], [0, 0, 1, 1], [], []>} : vector<16x16xf32>, vector<16x8xf32>, vector<16x8xf32> -> vector<16x8xf32>
    %64 = vector.extract_strided_slice %63 {offsets = [0, 0], sizes = [8, 8], strides = [1, 1]} : vector<16x8xf32> to vector<8x8xf32>
    %65 = vector.extract_strided_slice %63 {offsets = [8, 0], sizes = [8, 8], strides = [1, 1]} : vector<16x8xf32> to vector<8x8xf32>
    %c0_21 = arith.constant 0 : index
    %c0_22 = arith.constant 0 : index
    %66 = vector.load %arg6[%c0_21, %c0_22] : memref<8x8xf32, #tpu.memory_space<vmem>>, vector<8x8xf32>
    tpu.vector_store %arg6[%c0_21, %c0_22], %64 {strides = array<i32>} : memref<8x8xf32, #tpu.memory_space<vmem>>, vector<8x8xf32>,
    %c0_23 = arith.constant 0 : index
    %c0_24 = arith.constant 0 : index
    %67 = vector.load %arg7[%c0_23, %c0_24] : memref<8x8xf32, #tpu.memory_space<vmem>>, vector<8x8xf32>
    tpu.vector_store %arg7[%c0_23, %c0_24], %65 {strides = array<i32>} : memref<8x8xf32, #tpu.memory_space<vmem>>, vector<8x8xf32>,
    %c8_i32 = arith.constant 8 : i32
    %68 = arith.muli %arg0, %c8_i32 : i32
    %69 = tpu.iota {dimensions = array<i32: 0>} : vector<8x1xi32>
    %70 = vector.broadcast %68 : i32 to vector<8x1xi32>
    %71 = arith.addi %70, %69 : vector<8x1xi32>
    %c12_i32 = arith.constant 12 : i32
    %72 = vector.broadcast %c12_i32 : i32 to vector<8x1xi32>
    %73 = arith.cmpi slt, %71, %72 : vector<8x1xi32>
    %74 = arith.extui %73 : vector<8x1xi1> to vector<8x1xi32>
    %75 = arith.sitofp %74 : vector<8x1xi32> to vector<8x1xf32>
    %76 = vector.broadcast %75 : vector<8x1xf32> to vector<8x16xf32>
    %77 = arith.mulf %55, %76 : vector<8x16xf32>
    %cst_25 = arith.constant dense<0.000000e+00> : vector<16xf32>
    %78 = vector.multi_reduction <add>, %77, %cst_25 [0] : vector<8x16xf32> to vector<16xf32>
    %79 = vector.shape_cast %78 : vector<16xf32> to vector<1x16xf32>
    %80 = vector.shape_cast %79 : vector<1x16xf32> to vector<1x1x16xf32>
    %c0_26 = arith.constant 0 : index
    %c0_27 = arith.constant 0 : index
    %c0_28 = arith.constant 0 : index
    %81 = vector.load %arg8[%c0_26, %c0_27, %c0_28] : memref<1x1x16xf32, #tpu.memory_space<vmem>>, vector<1x1x16xf32>
    tpu.vector_store %arg8[%c0_26, %c0_27, %c0_28], %80 {strides = array<i32>} : memref<1x1x16xf32, #tpu.memory_space<vmem>>, vector<1x1x16xf32>,
    %82 = arith.subf %64, %0 : vector<8x8xf32>
    %83 = vector.broadcast %75 : vector<8x1xf32> to vector<8x8xf32>
    %84 = arith.mulf %82, %83 : vector<8x8xf32>
    %85 = arith.mulf %84, %84 : vector<8x8xf32>
    %cst_29 = arith.constant dense<0.000000e+00> : vector<8xf32>
    %86 = vector.multi_reduction <add>, %85, %cst_29 [1] : vector<8x8xf32> to vector<8xf32>
    %87 = vector.shape_cast %86 : vector<8xf32> to vector<8x1xf32>
    %cst_30 = arith.constant dense<0.000000e+00> : vector<1xf32>
    %88 = vector.multi_reduction <add>, %87, %cst_30 [0] : vector<8x1xf32> to vector<1xf32>
    %89 = vector.shape_cast %88 : vector<1xf32> to vector<1x1xf32>
    %90 = vector.shape_cast %89 : vector<1x1xf32> to vector<1x1x1xf32>
    %c0_31 = arith.constant 0 : index
    %c0_32 = arith.constant 0 : index
    %c0_33 = arith.constant 0 : index
    %91 = vector.load %arg9[%c0_31, %c0_32, %c0_33] : memref<1x1x1xf32, #tpu.memory_space<vmem>>, vector<1x1x1xf32>
    tpu.vector_store %arg9[%c0_31, %c0_32, %c0_33], %90 {strides = array<i32>} : memref<1x1x1xf32, #tpu.memory_space<vmem>>, vector<1x1x1xf32>,
    return
  }
  func.func @transform_0(%arg0: i32) -> (i32, i32) {
    %c0_i32 = arith.constant 0 : i32
    %c0_i32_0 = arith.constant 0 : i32
    return %arg0, %c0_i32 : i32, i32
  }
  func.func @transform_1(%arg0: i32) -> (i32, i32) {
    %c0_i32 = arith.constant 0 : i32
    %c0_i32_0 = arith.constant 0 : i32
    %c0_i32_1 = arith.constant 0 : i32
    return %c0_i32, %c0_i32_0 : i32, i32
  }
  func.func @transform_2(%arg0: i32) -> (i32, i32) {
    %c0_i32 = arith.constant 0 : i32
    %c0_i32_0 = arith.constant 0 : i32
    %c0_i32_1 = arith.constant 0 : i32
    return %c0_i32, %c0_i32_0 : i32, i32
  }
  func.func @transform_3(%arg0: i32) -> (i32, i32) {
    %c0_i32 = arith.constant 0 : i32
    %c0_i32_0 = arith.constant 0 : i32
    %c0_i32_1 = arith.constant 0 : i32
    return %c0_i32, %c0_i32_0 : i32, i32
  }
  func.func @transform_4(%arg0: i32) -> (i32, i32) {
    %c0_i32 = arith.constant 0 : i32
    %c0_i32_0 = arith.constant 0 : i32
    return %arg0, %c0_i32 : i32, i32
  }
  func.func @transform_5(%arg0: i32) -> (i32, i32) {
    %c0_i32 = arith.constant 0 : i32
    %c0_i32_0 = arith.constant 0 : i32
    return %arg0, %c0_i32 : i32, i32
  }
  func.func @transform_6(%arg0: i32) -> (i32, i32) {
    %c0_i32 = arith.constant 0 : i32
    %c0_i32_0 = arith.constant 0 : i32
    return %arg0, %c0_i32 : i32, i32
  }
  func.func @transform_7(%arg0: i32) -> (i32, i32, i32) {
    %c0_i32 = arith.constant 0 : i32
    %c0_i32_0 = arith.constant 0 : i32
    %c0_i32_1 = arith.constant 0 : i32
    return %arg0, %c0_i32, %c0_i32_0 : i32, i32, i32
  }
  func.func @transform_8(%arg0: i32) -> (i32, i32, i32) {
    %c0_i32 = arith.constant 0 : i32
    %c0_i32_0 = arith.constant 0 : i32
    %c0_i32_1 = arith.constant 0 : i32
    return %arg0, %c0_i32, %c0_i32_0 : i32, i32, i32
  }
}

</mosaic_0001>

<bundles_post_ra>
// kernel: ema_forward.1
= control target key start
LH: loop header
LB: loop body
LE: loop exit
PB: predicated region body
PF: predicated region fallthrough
CT: control target
= control target key end

     0   :  { %s1168_s0 = inlined_call_operand.vmem [shape: f32[12,8], index: 0, kind: input, shape index: {}]   ;;  %s1169_s1 = inlined_call_operand.vmem [shape: f32[8,16], index: 1, kind: input, shape index: {}]   ;;  %s1170_s2 = inlined_call_operand.vmem [shape: f32[16,8], index: 2, kind: input, shape index: {}]   ;;  %s1171_s3 = inlined_call_operand.vmem [shape: f32[1,16], index: 3, kind: input, shape index: {}]   ;;  %s1172_s4 = inlined_call_operand.hbm [shape: f32[12,16], index: 4, kind: output, shape index: {0}]   ;;  %s1173_s5 = inlined_call_operand.vmem [shape: f32[12,8], index: 5, kind: output, shape index: {1}]   ;;  %s1174_s6 = inlined_call_operand.vmem [shape: f32[12,8], index: 6, kind: output, shape index: {2}]   ;;  %s1175_s7 = inlined_call_operand.vmem [shape: f32[2,1,16], index: 7, kind: output, shape index: {3}]   ;;  %s1176_s8 = inlined_call_operand.vmem [shape: f32[2,1,1], index: 8, kind: output, shape index: {4}]  }
   0x1   :  { %1177 = sst [smem:[#allocation5_spill]] %s1168_s0 }
   0x2   :  { %14 = vsyncpa [#allocation3], 0 }
   0x3   :  { %16 = vsyncpa [#allocation3 + $0x1], 0  ;;  %s988_s27 = smov 0   ;;  %s990_s28 = smov 0  }
   0x4   :  { %s992_s29 = smov 0   ;;  %s994_s30 = smov 0  }
   0x5 LB: > { %s1009_s9 = sadd.s32 4294967295, %s938_s30   ;;  %s799_s10 = sadd.s32 4294967294, %s938_s30   ;;  %s938_s30 = sphi %s994_s30, %s1184_s30   ;;  %s934_s29 = sphi %s992_s29, %s1183_s29   ;;  %s930_s28 = sphi %s990_s28, %s1182_s28   ;;  %s926_s27 = sphi %s988_s27, %s1181_s27  }
   0x6   : > { %s1013_s11 = sadd.s32 1, %s938_s30   ;;  %s118_s12 = sadd.s32 1, %s934_s29 }
   0x7   : > { %s115_s13 = ssub.s32 %s938_s30, %s1013_s11  ;;  %p128_p0 = scmp.ne.s32.totalorder %s934_s29, %s930_s28 }
   0x8   : > { %p116_p1 = scmp.eq.s32.totalorder %s115_s13, 0  ;;  %p129_p2 = scmp.eq.s32.totalorder %s1009_s9, 1 }
   0x9   : > { %p134_p3 = scmp.ne.s32.totalorder %s930_s28, %s926_s27  ;;  %p135_p4 = scmp.eq.s32.totalorder %s799_s10, 1 }
   0xa   : > { %s1024_s14 = scalar_select %p116_p1, %s934_s29, %s118_s12  }
   0xb   : > { %p1026_p5 = por %p129_p2, %p128_p0  ;;  %p1030_p6 = por %p135_p4, %p134_p3 }
   0xc   : > { %p802_p7 = scmp.ge.s32.totalorder %s938_s30, 1  ;;  %p273_p8 = scmp.lt.s32.totalorder %s938_s30, 3 }
   0xe   : > { %p274_p9 = pnand %p802_p7, %p273_p8 }
   0xf   : > { %p320_p10 = scmp.lt.s32.totalorder (!%p274_p9), %s1009_s9, 1  ;;  %s1180_s0 = sld [smem:[#allocation5_spill]] (!%p274_p9) }
  0x10   : > { %277 = sbr.rel (%p274_p9) target bundleno = 1867 (0x74b), region = 36  ;;  %s813_s26 = sshll.u32 (!%p274_p9), %s1009_s9, 3 }
  0x11   : > { %s295_s10 = sand.u32 (!%p274_p9), 1, %s930_s28   ;;  %s816_s24 = sshll.u32 (!%p274_p9), %s1009_s9, 7 }
  0x12   : > { %s1072_s12 = sshll.u32 (!%p274_p9), %s295_s10, 3  ;;  %s942_s22 = smov (!%p274_p9), [#allocation2]  }
  0x13   : > { %s297_s13 = scalar_lea.vmem (!%p274_p9), [#allocation2], %s1072_s12 }
  0x14   : > { %s642_s25 = sshll.u32 (!%p274_p9), %s297_s13, 4  ;;  %s643_s25 = int_to_ptr.vmem [resolvable:$true] %s642_s25 }
  0x15   : > { %v339_v0 = vld [vmem:[%s1169_s1] sm:$0xff]  ;;  %v940_v1 = vmov 0.0   ;;  %vm941_vm0 = vmmov 0   ;;  %s1043_s19 = scalar_select %p320_p10, %s1009_s9, 1  ;;  %vm343_vm1 = vcmask 64512   ;;  %vm427_vm2 = vcmask 130048  }
  0x16   : > { %825 = vmatprep.subr.mxu0 %v940_v1  ;;  %827 = vmatprep.mubr.msk.f32.mxu0 %vm941_vm0, %v940_v1  ;;  %v808_v3 = vld [vmem:[%s1171_s3] ss:$0 sm:$0xff]  ;;  %v425_v9 = vlaneseq  ;;  %v585_v21 = vstv %s813_s26  ;;  %vm598_vm7 = vcmask 122880  }
  0x17   : > { %826 = vmatpush3.msra.mxu0 %v339_v0  ;;  %s1046_s20 = sshll.u32 %s1043_s19, 3  ;;  %s334_s21 = scalar_lea.vmem %s1175_s7, %s1043_s19 }
  0x18   : > { %s323_s23 = scalar_lea.vmem %s1180_s0, %s1046_s20  ;;  %v1063_v10 = vand.u32 127, %v425_v9  ;;  %v584_v20 = vshrl.u32 %v425_v9, 7  ;;  %s331_s18 = scalar_lea.vmem %s1174_s6, %s1046_s20 }
  0x19   : > { %v1052_v2 = vld [vmem:[%s323_s23] sm:$0xff]  ;;  %s327_s23 = scalar_lea.vmem %s1173_s5, %s1046_s20  ;;  %s640_s20 = scalar_lea.hbm %s1172_s4, %s816_s24 }
  0x1a   : > { %828 = vmatmul.mubr.msk.f32.vlgmr.msra.gmra.mxu0 %vm343_vm1, %v1052_v2  ;;  %v586_v23 = vadd.s32 %v585_v21, %v584_v20 }
  0x1c   : > { %vm587_vm5 = vcmp.lt.s32.totalorder %v586_v23, 12 }
  0x1d   : > { %v1075_v28 = vsel %vm587_vm5, 1.0, %v940_v1 }
  0xda   : > { %v413_v4 = vpop.f32.mrf.mxu0 }
  0xdb   : > { %v417_v5 = vmul.f32 2.0, %v413_v4  ;;  %v340_v4 = vld [vmem:[%s1170_s2] sm:$0xff] }
  0xdc   : > { %v829_v6 = vpop.f32.mrf.mxu0 }
  0xdd   : > { %v1059_v7 = vsub.f32 %v808_v3, %v417_v5  ;;  %v341_v3 = vld [vmem:[%s1170_s2 + $0x8] sm:$0xff] }
  0xde   : > { %830 = vmatprep.subr.mxu1 %v341_v3 }
  0xdf   : > { %v428_v8 = vsel %vm427_vm2, %v1059_v7, inf  ;;  %831 = vmatpush3.msra.mxu1 %v341_v3 }
  0xe0   : > { %429 = vmin.xlane.f32.xlu0 %v428_v8  ;;  %832 = vmatprep.subr.mxu1 %v340_v4 }
  0xe1   : > { %833 = vmatpush3.msra.mxu1 %v340_v4 }
 0x169   : > { %v430_v11 = vpop.xlane.xlu0 %429 }
 0x16a   : > { %vm431_vm3 = vcmp.eq.f32.partialorder %v1059_v7, %v430_v11 }
 0x16b   : > { %v432_v12 = vsel %vm431_vm3, %v1063_v10, 16 }
 0x16c   : > { %v433_v13 = vsel %vm427_vm2, %v432_v12, 2147483647 }
 0x16d   : > { %v435_v14 = vshra.s32 %v433_v13, 16  ;;  %v434_v16 = vand.u32 65535, %v433_v13 }
 0x16f   : > { %v437_v15 = vcvt.s32.f32 %v435_v14  ;;  %v436_v18 = vcvt.s32.f32 %v434_v16 }
 0x171   : > { %438 = vmin.xlane.f32.xlu0 %v437_v15 }
 0x1fa   : > { %v439_v17 = vpop.xlane.xlu0 %438 }
 0x1fb   : > { %vm440_vm4 = vcmp.eq.f32.partialorder %v437_v15, %v439_v17  ;;  %v445_v22 = vcvt.f32.s32 %v439_v17 }
 0x1fc   : > { %v441_v19 = vsel %vm440_vm4, %v436_v18, inf }
 0x1fd   : > { %442 = vmin.xlane.f32.xlu1 %v441_v19  ;;  %v446_v25 = vshll.u32 %v445_v22, 16 }
 0x286   : > { %v443_v24 = vpop.xlane.xlu1 %442 }
 0x287   : > { %v444_v26 = vcvt.f32.s32 %v443_v24 }
 0x289   : > { %v447_v27 = vadd.s32 %v446_v25, %v444_v26 }
 0x28b   : > { %vm448_vm6 = vcmp.eq.s32.totalorder %v1063_v10, %v447_v27 }
 0x28c   : > { %v809_v29 = vsel %vm448_vm6, 1.0, %v940_v1  ;;  %v449_v30 = vsel %vm448_vm6, 3e+38, %v1059_v7 }
 0x28d   : > { %834 = vmatprep.mubr.msk.f32.mxu1 %vm427_vm2, %v809_v29  ;;  %v450_v31 = vsel %vm427_vm2, %v449_v30, inf  ;;  %v590_v32 = vmul.f32 %v1075_v28, %v809_v29  ;;  %498 = vst.msk [vmem:[%s297_s13] sm:$0xff] %vm427_vm2, %v809_v29 }
 0x28e   : > { %451 = vmin.xlane.f32.xlu1 %v450_v31 }
 0x28f   : > { %v591_v33 = vsel %vm427_vm2, %v590_v32, 0.0 }
 0x290   : > { %v592_v34 = vrot.slane %v591_v33, 4 }
 0x292   : > { %v593_v35 = vadd.f32 %v592_v34, %v591_v33 }
 0x294   : > { %v594_v36 = vrot.slane %v593_v35, 2 }
 0x296   : > { %v595_v37 = vadd.f32 %v594_v36, %v593_v35 }
 0x298   : > { %v596_v38 = vrot.slane %v595_v37, 1 }
 0x29a   : > { %v597_v39 = vadd.f32 %v596_v38, %v595_v37 }
 0x29c   : > { %599 = vst.msk [vmem:[%s334_s21] sm:$0x1] %vm598_vm7, %v597_v39  ;;  %s878_s21 = scalar_lea.vmem %s643_s25, 128 }
 0x29d   : > { %p879_p11 = scmp.ne.s32.totalorder %s643_s25, %s878_s21 }
 0x29f   : > { %p880_p12 = pnand %p879_p11, %p1026_p5 }
 0x2a1   : > { %p881_p13 = pneg %p880_p12 }
 0x317   : > { %v452_v40 = vpop.xlane.xlu1 %451 }
 0x318   : > { %vm453_vm8 = vcmp.eq.f32.partialorder %v449_v30, %v452_v40 }
 0x319   : > { %v454_v41 = vsel %vm453_vm8, %v1063_v10, 16 }
 0x31a   : > { %v455_v42 = vsel %vm427_vm2, %v454_v41, 2147483647 }
 0x31b   : > { %v457_v43 = vshra.s32 %v455_v42, 16  ;;  %v456_v45 = vand.u32 65535, %v455_v42 }
 0x31d   : > { %v459_v44 = vcvt.s32.f32 %v457_v43  ;;  %v458_v47 = vcvt.s32.f32 %v456_v45 }
 0x31f   : > { %460 = vmin.xlane.f32.xlu0 %v459_v44 }
 0x3a8   : > { %v461_v46 = vpop.xlane.xlu0 %460 }
 0x3a9   : > { %vm462_vm9 = vcmp.eq.f32.partialorder %v459_v44, %v461_v46  ;;  %v467_v49 = vcvt.f32.s32 %v461_v46 }
 0x3aa   : > { %v463_v48 = vsel %vm462_vm9, %v458_v47, inf }
 0x3ab   : > { %464 = vmin.xlane.f32.xlu1 %v463_v48  ;;  %v468_v51 = vshll.u32 %v467_v49, 16 }
 0x434   : > { %v465_v50 = vpop.xlane.xlu1 %464 }
 0x435   : > { %v466_v52 = vcvt.f32.s32 %v465_v50 }
 0x437   : > { %v469_v53 = vadd.s32 %v468_v51, %v466_v52 }
 0x439   : > { %vm470_vm10 = vcmp.eq.s32.totalorder %v1063_v10, %v469_v53 }
 0x43a   : > { %vm471_vm11 = vmor %vm448_vm6, %vm470_vm10 }
 0x43b   : > { %v472_v54 = vsel %vm471_vm11, 3e+38, %v1059_v7 }
 0x43c   : > { %v473_v55 = vsel %vm427_vm2, %v472_v54, inf }
 0x43d   : > { %474 = vmin.xlane.f32.xlu0 %v473_v55 }
 0x4c6   : > { %v475_v56 = vpop.xlane.xlu0 %474 }
 0x4c7   : > { %vm476_vm12 = vcmp.eq.f32.partialorder %v472_v54, %v475_v56 }
 0x4c8   : > { %v477_v57 = vsel %vm476_vm12, %v1063_v10, 16 }
 0x4c9   : > { %v478_v58 = vsel %vm427_vm2, %v477_v57, 2147483647 }
 0x4ca   : > { %v480_v59 = vshra.s32 %v478_v58, 16  ;;  %v479_v61 = vand.u32 65535, %v478_v58 }
 0x4cc   : > { %v482_v60 = vcvt.s32.f32 %v480_v59  ;;  %v481_v63 = vcvt.s32.f32 %v479_v61 }
 0x4ce   : > { %483 = vmin.xlane.f32.xlu1 %v482_v60 }
 0x557   : > { %v484_v62 = vpop.xlane.xlu1 %483 }
 0x558   : > { %vm485_vm13 = vcmp.eq.f32.partialorder %v482_v60, %v484_v62  ;;  %v490_v5 = vcvt.f32.s32 %v484_v62 }
 0x559   : > { %v486_v0 = vsel %vm485_vm13, %v481_v63, inf }
 0x55a   : > { %487 = vmin.xlane.f32.xlu0 %v486_v0  ;;  %v491_v7 = vshll.u32 %v490_v5, 16 }
 0x5e3   : > { %v488_v6 = vpop.xlane.xlu0 %487 }
 0x5e4   : > { %v489_v8 = vcvt.f32.s32 %v488_v6 }
 0x5e6   : > { %v492_v9 = vadd.s32 %v491_v7, %v489_v8 }
 0x5e8   : > { %vm495_vm14 = vcmp.eq.s32.totalorder %v1063_v10, %v492_v9 }
 0x5e9   : > { %v810_v11 = vsel %vm495_vm14, 1.0, %v940_v1 }
 0x5ea   : > { %835 = vmatmul.mubr.msk.f32.vlgmr.msra.gmra.mxu1 %vm427_vm2, %v810_v11 }
 0x6aa   : > { %v836_v12 = vpop.f32.mrf.mxu1 }
 0x6ab   : > { %581 = vst.msk [vmem:[%s331_s18] sm:$0xff] %vm343_vm1, %v836_v12  ;;  %s615_s18 = scalar_lea.sflag [#allocation3], %s295_s10 }
 0x6ac   : > { %v571_v13 = vpop.f32.mrf.mxu1 }
 0x6ad   : > { %580 = vst.msk [vmem:[%s327_s23] sm:$0xff] %vm343_vm1, %v571_v13  ;;  %v600_v1 = vsub.f32 %v571_v13, %v1052_v2  ;;  %s882_s23 = sshll.u32 %s942_s22, 4  ;;  %s883_s23 = int_to_ptr.vmem [resolvable:$false] %s882_s23 }
 0x6ae   : > { %s884_s0 = scalar_lea.vmem %s883_s23, 256  ;;  %p885_p0 = scmp.lt.s32.totalorder %s643_s25, %s883_s23 }
 0x6af   : > { %v601_v10 = vmul.f32 %v1075_v28, %v600_v1  ;;  %p886_p1 = scmp.lt.s32.totalorder %s884_s0, %s878_s21 }
 0x6b1   : > { %v602_v14 = vmul.f32 %v601_v10, %v601_v10  ;;  %p887_p2 = por %p886_p1, %p885_p0 }
 0x6b3   : > { %v603_v15 = vsel %vm343_vm1, %v602_v14, 0.0  ;;  %p888_p3 = pnand %p887_p2, %p881_p13 }
 0x6b4   : > { %604 = vadd.xlane.f32.xlu1 %v603_v15 }
 0x6b5   : > { %891 = shalt.err (!%p888_p3)
}
 0x6b6   : > { %s892_s9 = scalar_lea.hbm %s640_s20, 128  ;;  %s896_s13 = scalar_lea.hbm %s1172_s4, 256 }
 0x6b7   : > { %p893_p4 = scmp.ne.s32.totalorder %s640_s20, %s892_s9  ;;  %p897_p9 = scmp.lt.s32.totalorder %s640_s20, %s1172_s4 }
 0x6b8   : > { %p898_p10 = scmp.lt.s32.totalorder %s896_s13, %s892_s9 }
 0x6b9   : > { %p894_p7 = pnand %p893_p4, %p1026_p5 }
 0x6ba   : > { %p899_p11 = por %p898_p10, %p897_p9 }
 0x6bb   : > { %p895_p8 = pneg %p894_p7 }
 0x6bd   : > { %p900_p12 = pnand %p899_p11, %p895_p8 }
 0x6bf   : > { %903 = shalt.err (!%p900_p12)
}
 0x6c0   : > { %837 = dma.vmem_to_hbm [thread:$0]  (%p1026_p5), %s643_s25, 128, %s640_s20, %s615_s18   ;;  %vm612_vm15 = vcmask 0  }
 0x6c1   : > { %s337_s21 = scalar_lea.vmem %s1176_s8, %s1043_s19 }
 0x73d   : > { %v605_v2 = vpop.xlane.xlu1 %604 }
 0x73e   : > { %v606_v16 = vrot.slane %v605_v2, 4 }
 0x740   : > { %v607_v17 = vadd.f32 %v606_v16, %v605_v2 }
 0x742   : > { %v608_v18 = vrot.slane %v607_v17, 2 }
 0x744   : > { %v609_v19 = vadd.f32 %v608_v18, %v607_v17 }
 0x746   : > { %v610_v20 = vrot.slane %v609_v19, 1 }
 0x748   : > { %v611_v21 = vadd.f32 %v610_v20, %v609_v19 }
 0x74a   : > { %613 = vst.msk [vmem:[%s337_s21] sm:$0x1] %vm612_vm15, %v611_v21 }
 0x74b PF: > { %p843_p13 = scmp.ge.s32.totalorder %s938_s30, 2  ;;  %s666_s15 = sand.u32 1, %s926_s27  }
 0x74c   : > { %s667_s25 = scalar_lea.sflag [#allocation3], %s666_s15 }
 0x74d   : > { %p840_p5 = pnand %p843_p13, %p1030_p6 }
 0x74f   : > { %p841_p0 = pneg %p840_p5 }
 0x751   : > { %921 = dma.done.wait (%p841_p0), %s667_s25, 128  }
 0x752   : > { %923 = vsyncadd (%p841_p0), %s667_s25, 4294967168  ;;  %p19_p1 = scmp.ge.s32.totalorder %s1013_s11, 4   ;;  %s1181_s27 = smov %s930_s28 }
 0x753   : > { %s1182_s28 = smov %s934_s29  ;;  %s1183_s29 = smov %s1024_s14 }
 0x754   : > { %s1184_s30 = smov %s1013_s11  ;;  %21 = sbr.rel (!%p19_p1) target bundleno = 5 (0x5), region = 119 }
 0x759   :  { %698 = vsyncpa [#allocation3], 1 }
 0x75a   :  { %700 = vsyncpa [#allocation3 + $0x1], 1 }

</bundles_post_ra>
